<compile_context>
chip_gen: v5e
topology: v5e:2x2
jax: 0.10.0
libtpu: 0.0.40
codegen_flags: <defaults>
</compile_context>

<pallas_src>
import functools

import jax
import jax.numpy as jnp
from jax import lax
from jax.experimental import pallas as pl
from jax.experimental.pallas import tpu as pltpu

BATCH_SIZE = 16   # small analogue of the PyTorch global BATCH_SIZE = 512
LANE = 128        # TPU lane width; fc output columns are padded to this


# ----------------------------------------------------------------------------
# General path: per-row HBM gather, double-buffered by pooling window.
# ----------------------------------------------------------------------------
def _gather_pool_fc_kernel(c, bb, tok_ref, emb_hbm, wt_ref, b_ref, out_ref,
                           gather_buf, acc_ref, sems):
    # tok_ref   : (L,)       int32 SMEM  scalar-prefetched token ids
    # emb_hbm   : (V, D)     f32   HBM   embedding table (manual DMA gather)
    # wt_ref    : (D, Cp)    f32   VMEM  fc weight, transposed + lane-padded
    # b_ref     : (1, Cp)    f32   VMEM  fc bias, lane-padded
    # out_ref   : (bb, Cp)   f32   VMEM  logits for this batch tile
    # gather_buf: (2, bb, D) f32   VMEM  double-buffered window of gathered rows
    # acc_ref   : (bb, D)    f32   VMEM  pooling accumulator
    # sems      : (2,)             DMA   one semaphore per window slot
    base = pl.program_id(0) * (bb * c)

    def issue_window(j, slot):
        # Row b of pooling window j is the embedding of token base + b*c + j.
        # The flat token offset is carried (+= c per row): no div/mod/mul in
        # the loop; unroll is capped at 8 (not full) to bound code size.
        def issue_row(b, off):
            tid = tok_ref[off]
            pltpu.make_async_copy(emb_hbm.at[tid], gather_buf.at[slot, b],
                                  sems.at[slot]).start()
            return off + c
        lax.fori_loop(0, bb, issue_row, base + j, unroll=min(8, bb))

    acc_ref[...] = jnp.zeros_like(acc_ref)
    issue_window(0, 0)

    def window_body(j, carry):
        slot = j & 1
        # Prefetch the next window into the other slot BEFORE waiting, so its
        # DMAs overlap both this wait and the accumulate below.
        @pl.when(j + 1 < c)
        def _():
            issue_window(j + 1, 1 - slot)

        # Aggregated wait: the bb row copies all signal sems[slot]; a single
        # (bb, D) descriptor accounts for exactly their total bytes.
        pltpu.make_async_copy(gather_buf.at[slot], gather_buf.at[slot],
                              sems.at[slot]).wait()

        acc_ref[...] += gather_buf[slot]
        return carry

    lax.fori_loop(0, c, window_body, 0)

    # avg_pool1d(kernel=c, stride=c) -> scale once in f32; then fc on the MXU.
    pooled = acc_ref[...] * jnp.float32(1.0 / c)                      # (bb, D)
    logits = jnp.dot(pooled, wt_ref[...],
                     preferred_element_type=jnp.float32) + b_ref[...]
    out_ref[...] = logits.astype(out_ref.dtype)


# ----------------------------------------------------------------------------
# Small-vocab fast path: whole table in VMEM, no per-row HBM DMAs.
# ----------------------------------------------------------------------------
def _small_vocab_pool_fc_kernel(c, bb, tok_ref, emb_ref, wt_ref, b_ref,
                                out_ref, acc_ref):
    # emb_ref: (V, 1, D) f32 VMEM — the unit middle axis keeps the dynamic row
    # index on a non-tiled leading dim (cheap, well-supported load); the 8x
    # sublane padding of the table is fine because this path is gated on V.
    base = pl.program_id(0) * (bb * c)
    D = emb_ref.shape[2]
    inv_c = jnp.float32(1.0 / c)

    for b in range(bb):                    # static: fast path is gated small
        start = base + b * c

        def win_body(j, row):
            return row + emb_ref[tok_ref[start + j]]          # (1, D)

        row = lax.fori_loop(0, c, win_body, jnp.zeros((1, D), jnp.float32))
        acc_ref[pl.ds(b, 1), :] = row * inv_c

    logits = jnp.dot(acc_ref[...], wt_ref[...],
                     preferred_element_type=jnp.float32) + b_ref[...]
    out_ref[...] = logits.astype(out_ref.dtype)


# ----------------------------------------------------------------------------
# Wrapper
# ----------------------------------------------------------------------------
def _tensorcores_per_chip():
    try:
        info = pltpu.get_tpu_info()
    except Exception:
        return 1
    for name in ("num_tensorcores", "tensorcores_per_chip", "num_cores",
                 "core_count"):
        v = getattr(info, name, None)
        if isinstance(v, int) and v > 0:
            return v
    return 1


def _pick_batch_tile(batch_size):
    # v5e/v6e (single TensorCore): one big tile — no per-grid-step overhead and
    # the largest possible MXU M.  v7x (2 TCs): exactly two "parallel" tiles,
    # each as large as possible.
    if _tensorcores_per_chip() < 2 or batch_size < 16:
        return batch_size
    half = batch_size // 2
    half -= half % 8
    if half >= 8 and batch_size % half == 0:
        return half
    return batch_size


def text_sentiment_forward(text, emb_w, fc_w, fc_b, batch_size=BATCH_SIZE,
                           batch_tile=None, force_gather=False):
    """Replicates TextSentiment.forward for a flat 1-D token tensor `text`."""
    n = text.shape[0]
    c = n // batch_size
    if c == 0:
        raise ValueError(f"need at least batch_size={batch_size} tokens, got {n}")
    L = batch_size * c                      # trim, like embedded[:BATCH_SIZE*c]
    V, D = emb_w.shape
    C = fc_w.shape[0]
    Cp = ((C + LANE - 1) // LANE) * LANE    # lane-pad fc columns

    bb = _pick_batch_tile(batch_size) if batch_tile is None else batch_tile
    if bb != batch_size and (bb % 8 != 0 or batch_size % bb != 0):
        raise ValueError("batch_tile must be a multiple of 8 dividing batch_size")
    num_tiles = batch_size // bb

    # Token ids.  torch nn.Embedding raises on OOB ids; here we clamp so the
    # gather stays in-bounds.
    # TODO(synk): no clean in-kernel equivalent of nn.Embedding's OOB error.
    tok = jnp.clip(text[:L].astype(jnp.int32), 0, V - 1)

    # fc weight transposed + zero-padded to a lane-dense (D, Cp) slab.
    wt_pad = jnp.zeros((D, Cp), jnp.float32).at[:, :C].set(
        fc_w.T.astype(jnp.float32))
    b_pad = jnp.zeros((1, Cp), jnp.float32).at[:, :C].set(
        fc_b.astype(jnp.float32))

    # Fast path when the (sublane-padded) table fits easily in VMEM and the
    # total token count is small enough for a static per-row loop.
    table_vmem_bytes = V * 8 * max(D, LANE) * 4
    use_fast = (not force_gather) and table_vmem_bytes <= (2 << 20) and L <= 2048

    if use_fast:
        emb_in = emb_w.astype(jnp.float32).reshape(V, 1, D)
        in_specs = [
            pl.BlockSpec((V, 1, D), lambda i, tok: (0, 0, 0)),   # whole table
            pl.BlockSpec((D, Cp), lambda i, tok: (0, 0)),        # fc weight^T
            pl.BlockSpec((1, Cp), lambda i, tok: (0, 0)),        # fc bias
        ]
        scratch = [pltpu.VMEM((bb, D), jnp.float32)]             # pooled acc
        kern = functools.partial(_small_vocab_pool_fc_kernel, c, bb)
    else:
        emb_in = emb_w.astype(jnp.float32)
        in_specs = [
            pl.BlockSpec(memory_space=pl.ANY),                   # table in HBM
            pl.BlockSpec((D, Cp), lambda i, tok: (0, 0)),
            pl.BlockSpec((1, Cp), lambda i, tok: (0, 0)),
        ]
        scratch = [
            pltpu.VMEM((2, bb, D), jnp.float32),                 # window buffer
            pltpu.VMEM((bb, D), jnp.float32),                    # pooled acc
            pltpu.SemaphoreType.DMA((2,)),                       # per-slot sem
        ]
        kern = functools.partial(_gather_pool_fc_kernel, c, bb)

    grid_spec = pltpu.PrefetchScalarGridSpec(
        num_scalar_prefetch=1,
        grid=(num_tiles,),
        in_specs=in_specs,
        out_specs=pl.BlockSpec((bb, Cp), lambda i, tok: (i, 0)),
        scratch_shapes=scratch,
    )

    # VMEM budget from actual buffer sizes (double-buffered pipelined operands).
    vmem_need = 4 * (3 * bb * D + 2 * (D * Cp + Cp + bb * Cp)) + 4 * L
    if use_fast:
        vmem_need += 2 * table_vmem_bytes
    vmem_limit = int(min(64 << 20, max(32 << 20, 2 * vmem_need)))

    cost = pl.CostEstimate(
        flops=2 * batch_size * D * Cp + batch_size * c * D,
        transcendentals=0,
        bytes_accessed=(L * D * 4 + D * Cp * 4 + Cp * 4
                        + batch_size * Cp * 4 + L * 4),
    )

    out_padded = pl.pallas_call(
        kern,
        out_shape=jax.ShapeDtypeStruct((batch_size, Cp), jnp.float32),
        grid_spec=grid_spec,
        compiler_params=pltpu.CompilerParams(
            dimension_semantics=("parallel",),
            vmem_limit_bytes=vmem_limit,
        ),
        cost_estimate=cost,
    )(tok, emb_in, wt_pad, b_pad)

    return out_padded[:, :C]


if __name__ == "__main__":
    vocab_size, embed_dim, num_class = 64, 128, 4
    seq_len = 35  # not a multiple of BATCH_SIZE -> c = 2, keep 32, trim 3

    key = jax.random.PRNGKey(0)
    k_emb, k_fc, k_txt = jax.random.split(key, 3)
    initrange = 0.5
    emb_w = jax.random.uniform(k_emb, (vocab_size, embed_dim), jnp.float32,
                               -initrange, initrange)
    fc_w = jax.random.uniform(k_fc, (num_class, embed_dim), jnp.float32,
                              -initrange, initrange)
    fc_b = jnp.zeros((num_class,), jnp.float32)
    text = jax.random.randint(k_txt, (seq_len,), 0, vocab_size, dtype=jnp.int32)

    # Pure-JAX reference of the PyTorch forward semantics.
    c = seq_len // BATCH_SIZE
    emb = emb_w[text[:BATCH_SIZE * c]]                               # (L, D)
    pooled = emb.reshape(BATCH_SIZE, c, embed_dim).mean(axis=1)      # (B, D)
    ref = pooled @ fc_w.T + fc_b                                     # (B, C)

    # 1) Small-vocab fast path (whole table in VMEM, no per-row HBM DMAs).
    out_fast = jax.block_until_ready(
        text_sentiment_forward(text, emb_w, fc_w, fc_b))
    assert out_fast.shape == (BATCH_SIZE, num_class), out_fast.shape
    assert jnp.allclose(out_fast, ref, atol=1e-4, rtol=1e-4), "fast path mismatch"

    # 2) General path (HBM row-gather, double-buffered by pooling window).
    out_gather = jax.block_until_ready(
        text_sentiment_forward(text, emb_w, fc_w, fc_b, force_gather=True))
    assert out_gather.shape == (BATCH_SIZE, num_class), out_gather.shape
    assert jnp.allclose(out_gather, ref, atol=1e-4, rtol=1e-4), "gather path mismatch"

    print("KERNEL_OK")
</pallas_src>

<mosaic_0001>
module attributes {stable_mosaic.version = 11 : i64} {
  func.func @_small_vocab_pool_fc_kernel(%arg0: i32, %arg1: memref<32xi32, #tpu.memory_space<smem>>, %arg2: memref<64x1x128xf32, #tpu.memory_space<vmem>>, %arg3: memref<128x128xf32, #tpu.memory_space<vmem>>, %arg4: memref<1x128xf32, #tpu.memory_space<vmem>>, %arg5: memref<16x128xf32, #tpu.memory_space<vmem>>, %arg6: memref<16x128xf32, #tpu.memory_space<vmem>>) attributes {dimension_semantics = [#tpu.dimension_semantics<parallel>], iteration_bounds = array<i64: 1>, scalar_prefetch = 1 : i64, scratch_operands = 1 : i64, tpu.core_type = #tpu.core_type<tc>, window_params = [{pipeline_mode = #tpu.pipeline_mode<synchronous>, transform_indices = @transform_0, window_bounds = array<i64: 64, 1, 128>}, {pipeline_mode = #tpu.pipeline_mode<synchronous>, transform_indices = @transform_1, window_bounds = array<i64: 128, 128>}, {pipeline_mode = #tpu.pipeline_mode<synchronous>, transform_indices = @transform_2, window_bounds = array<i64: 1, 128>}, {transform_indices = @transform_3, window_bounds = array<i64: 16, 128>}]} {
    %c32_i32 = arith.constant 32 : i32
    %0 = arith.muli %arg0, %c32_i32 : i32
    %c0_i32 = arith.constant 0 : i32
    %1 = arith.addi %0, %c0_i32 : i32
    %cst = arith.constant 0.000000e+00 : f32
    %2 = vector.broadcast %cst : f32 to vector<1x128xf32>
    %c0_i32_0 = arith.constant 0 : i32
    %c2_i32 = arith.constant 2 : i32
    %3 = arith.addi %c0_i32_0, %c2_i32 : i32
    %c1_i32 = arith.constant 1 : i32
    %4 = scf.for %arg7 = %c0_i32_0 to %3 step %c1_i32 iter_args(%arg8 = %2) -> (vector<1x128xf32>)  : i32 {
      %120 = arith.addi %1, %arg7 : i32
      %121 = arith.index_cast %120 : i32 to index
      %122 = memref.load %arg1[%121] : memref<32xi32, #tpu.memory_space<smem>>
      %123 = arith.index_cast %122 : i32 to index
      %c0_119 = arith.constant 0 : index
      %c0_120 = arith.constant 0 : index
      %124 = vector.load %arg2[%123, %c0_119, %c0_120] : memref<64x1x128xf32, #tpu.memory_space<vmem>>, vector<1x1x128xf32>
      %125 = vector.shape_cast %124 : vector<1x1x128xf32> to vector<1x128xf32>
      %126 = arith.addf %arg8, %125 : vector<1x128xf32>
      scf.yield %126 : vector<1x128xf32>
    }
    %c2_i32_1 = arith.constant 2 : i32
    %cst_2 = arith.constant 5.000000e-01 : f32
    %5 = vector.broadcast %cst_2 : f32 to vector<1x128xf32>
    %6 = arith.mulf %4, %5 : vector<1x128xf32>
    %c0 = arith.constant 0 : index
    %c0_3 = arith.constant 0 : index
    %7 = vector.load %arg6[%c0, %c0_3] : memref<16x128xf32, #tpu.memory_space<vmem>>, vector<1x128xf32>
    tpu.vector_store %arg6[%c0, %c0_3], %6 {strides = array<i32>} : memref<16x128xf32, #tpu.memory_space<vmem>>, vector<1x128xf32>,
    %c2_i32_4 = arith.constant 2 : i32
    %8 = arith.addi %0, %c2_i32_4 : i32
    %cst_5 = arith.constant 0.000000e+00 : f32
    %9 = vector.broadcast %cst_5 : f32 to vector<1x128xf32>
    %c0_i32_6 = arith.constant 0 : i32
    %c2_i32_7 = arith.constant 2 : i32
    %10 = arith.addi %c0_i32_6, %c2_i32_7 : i32
    %c1_i32_8 = arith.constant 1 : i32
    %11 = scf.for %arg7 = %c0_i32_6 to %10 step %c1_i32_8 iter_args(%arg8 = %9) -> (vector<1x128xf32>)  : i32 {
      %120 = arith.addi %8, %arg7 : i32
      %121 = arith.index_cast %120 : i32 to index
      %122 = memref.load %arg1[%121] : memref<32xi32, #tpu.memory_space<smem>>
      %123 = arith.index_cast %122 : i32 to index
      %c0_119 = arith.constant 0 : index
      %c0_120 = arith.constant 0 : index
      %124 = vector.load %arg2[%123, %c0_119, %c0_120] : memref<64x1x128xf32, #tpu.memory_space<vmem>>, vector<1x1x128xf32>
      %125 = vector.shape_cast %124 : vector<1x1x128xf32> to vector<1x128xf32>
      %126 = arith.addf %arg8, %125 : vector<1x128xf32>
      scf.yield %126 : vector<1x128xf32>
    }
    %c2_i32_9 = arith.constant 2 : i32
    %cst_10 = arith.constant 5.000000e-01 : f32
    %12 = vector.broadcast %cst_10 : f32 to vector<1x128xf32>
    %13 = arith.mulf %11, %12 : vector<1x128xf32>
    %c1 = arith.constant 1 : index
    %c0_11 = arith.constant 0 : index
    %14 = vector.load %arg6[%c1, %c0_11] : memref<16x128xf32, #tpu.memory_space<vmem>>, vector<1x128xf32>
    tpu.vector_store %arg6[%c1, %c0_11], %13 {strides = array<i32>} : memref<16x128xf32, #tpu.memory_space<vmem>>, vector<1x128xf32>,
    %c4_i32 = arith.constant 4 : i32
    %15 = arith.addi %0, %c4_i32 : i32
    %cst_12 = arith.constant 0.000000e+00 : f32
    %16 = vector.broadcast %cst_12 : f32 to vector<1x128xf32>
    %c0_i32_13 = arith.constant 0 : i32
    %c2_i32_14 = arith.constant 2 : i32
    %17 = arith.addi %c0_i32_13, %c2_i32_14 : i32
    %c1_i32_15 = arith.constant 1 : i32
    %18 = scf.for %arg7 = %c0_i32_13 to %17 step %c1_i32_15 iter_args(%arg8 = %16) -> (vector<1x128xf32>)  : i32 {
      %120 = arith.addi %15, %arg7 : i32
      %121 = arith.index_cast %120 : i32 to index
      %122 = memref.load %arg1[%121] : memref<32xi32, #tpu.memory_space<smem>>
      %123 = arith.index_cast %122 : i32 to index
      %c0_119 = arith.constant 0 : index
      %c0_120 = arith.constant 0 : index
      %124 = vector.load %arg2[%123, %c0_119, %c0_120] : memref<64x1x128xf32, #tpu.memory_space<vmem>>, vector<1x1x128xf32>
      %125 = vector.shape_cast %124 : vector<1x1x128xf32> to vector<1x128xf32>
      %126 = arith.addf %arg8, %125 : vector<1x128xf32>
      scf.yield %126 : vector<1x128xf32>
    }
    %c2_i32_16 = arith.constant 2 : i32
    %cst_17 = arith.constant 5.000000e-01 : f32
    %19 = vector.broadcast %cst_17 : f32 to vector<1x128xf32>
    %20 = arith.mulf %18, %19 : vector<1x128xf32>
    %c2 = arith.constant 2 : index
    %c0_18 = arith.constant 0 : index
    %21 = vector.load %arg6[%c2, %c0_18] : memref<16x128xf32, #tpu.memory_space<vmem>>, vector<1x128xf32>
    tpu.vector_store %arg6[%c2, %c0_18], %20 {strides = array<i32>} : memref<16x128xf32, #tpu.memory_space<vmem>>, vector<1x128xf32>,
    %c6_i32 = arith.constant 6 : i32
    %22 = arith.addi %0, %c6_i32 : i32
    %cst_19 = arith.constant 0.000000e+00 : f32
    %23 = vector.broadcast %cst_19 : f32 to vector<1x128xf32>
    %c0_i32_20 = arith.constant 0 : i32
    %c2_i32_21 = arith.constant 2 : i32
    %24 = arith.addi %c0_i32_20, %c2_i32_21 : i32
    %c1_i32_22 = arith.constant 1 : i32
    %25 = scf.for %arg7 = %c0_i32_20 to %24 step %c1_i32_22 iter_args(%arg8 = %23) -> (vector<1x128xf32>)  : i32 {
      %120 = arith.addi %22, %arg7 : i32
      %121 = arith.index_cast %120 : i32 to index
      %122 = memref.load %arg1[%121] : memref<32xi32, #tpu.memory_space<smem>>
      %123 = arith.index_cast %122 : i32 to index
      %c0_119 = arith.constant 0 : index
      %c0_120 = arith.constant 0 : index
      %124 = vector.load %arg2[%123, %c0_119, %c0_120] : memref<64x1x128xf32, #tpu.memory_space<vmem>>, vector<1x1x128xf32>
      %125 = vector.shape_cast %124 : vector<1x1x128xf32> to vector<1x128xf32>
      %126 = arith.addf %arg8, %125 : vector<1x128xf32>
      scf.yield %126 : vector<1x128xf32>
    }
    %c2_i32_23 = arith.constant 2 : i32
    %cst_24 = arith.constant 5.000000e-01 : f32
    %26 = vector.broadcast %cst_24 : f32 to vector<1x128xf32>
    %27 = arith.mulf %25, %26 : vector<1x128xf32>
    %c3 = arith.constant 3 : index
    %c0_25 = arith.constant 0 : index
    %28 = vector.load %arg6[%c3, %c0_25] : memref<16x128xf32, #tpu.memory_space<vmem>>, vector<1x128xf32>
    tpu.vector_store %arg6[%c3, %c0_25], %27 {strides = array<i32>} : memref<16x128xf32, #tpu.memory_space<vmem>>, vector<1x128xf32>,
    %c8_i32 = arith.constant 8 : i32
    %29 = arith.addi %0, %c8_i32 : i32
    %cst_26 = arith.constant 0.000000e+00 : f32
    %30 = vector.broadcast %cst_26 : f32 to vector<1x128xf32>
    %c0_i32_27 = arith.constant 0 : i32
    %c2_i32_28 = arith.constant 2 : i32
    %31 = arith.addi %c0_i32_27, %c2_i32_28 : i32
    %c1_i32_29 = arith.constant 1 : i32
    %32 = scf.for %arg7 = %c0_i32_27 to %31 step %c1_i32_29 iter_args(%arg8 = %30) -> (vector<1x128xf32>)  : i32 {
      %120 = arith.addi %29, %arg7 : i32
      %121 = arith.index_cast %120 : i32 to index
      %122 = memref.load %arg1[%121] : memref<32xi32, #tpu.memory_space<smem>>
      %123 = arith.index_cast %122 : i32 to index
      %c0_119 = arith.constant 0 : index
      %c0_120 = arith.constant 0 : index
      %124 = vector.load %arg2[%123, %c0_119, %c0_120] : memref<64x1x128xf32, #tpu.memory_space<vmem>>, vector<1x1x128xf32>
      %125 = vector.shape_cast %124 : vector<1x1x128xf32> to vector<1x128xf32>
      %126 = arith.addf %arg8, %125 : vector<1x128xf32>
      scf.yield %126 : vector<1x128xf32>
    }
    %c2_i32_30 = arith.constant 2 : i32
    %cst_31 = arith.constant 5.000000e-01 : f32
    %33 = vector.broadcast %cst_31 : f32 to vector<1x128xf32>
    %34 = arith.mulf %32, %33 : vector<1x128xf32>
    %c4 = arith.constant 4 : index
    %c0_32 = arith.constant 0 : index
    %35 = vector.load %arg6[%c4, %c0_32] : memref<16x128xf32, #tpu.memory_space<vmem>>, vector<1x128xf32>
    tpu.vector_store %arg6[%c4, %c0_32], %34 {strides = array<i32>} : memref<16x128xf32, #tpu.memory_space<vmem>>, vector<1x128xf32>,
    %c10_i32 = arith.constant 10 : i32
    %36 = arith.addi %0, %c10_i32 : i32
    %cst_33 = arith.constant 0.000000e+00 : f32
    %37 = vector.broadcast %cst_33 : f32 to vector<1x128xf32>
    %c0_i32_34 = arith.constant 0 : i32
    %c2_i32_35 = arith.constant 2 : i32
    %38 = arith.addi %c0_i32_34, %c2_i32_35 : i32
    %c1_i32_36 = arith.constant 1 : i32
    %39 = scf.for %arg7 = %c0_i32_34 to %38 step %c1_i32_36 iter_args(%arg8 = %37) -> (vector<1x128xf32>)  : i32 {
      %120 = arith.addi %36, %arg7 : i32
      %121 = arith.index_cast %120 : i32 to index
      %122 = memref.load %arg1[%121] : memref<32xi32, #tpu.memory_space<smem>>
      %123 = arith.index_cast %122 : i32 to index
      %c0_119 = arith.constant 0 : index
      %c0_120 = arith.constant 0 : index
      %124 = vector.load %arg2[%123, %c0_119, %c0_120] : memref<64x1x128xf32, #tpu.memory_space<vmem>>, vector<1x1x128xf32>
      %125 = vector.shape_cast %124 : vector<1x1x128xf32> to vector<1x128xf32>
      %126 = arith.addf %arg8, %125 : vector<1x128xf32>
      scf.yield %126 : vector<1x128xf32>
    }
    %c2_i32_37 = arith.constant 2 : i32
    %cst_38 = arith.constant 5.000000e-01 : f32
    %40 = vector.broadcast %cst_38 : f32 to vector<1x128xf32>
    %41 = arith.mulf %39, %40 : vector<1x128xf32>
    %c5 = arith.constant 5 : index
    %c0_39 = arith.constant 0 : index
    %42 = vector.load %arg6[%c5, %c0_39] : memref<16x128xf32, #tpu.memory_space<vmem>>, vector<1x128xf32>
    tpu.vector_store %arg6[%c5, %c0_39], %41 {strides = array<i32>} : memref<16x128xf32, #tpu.memory_space<vmem>>, vector<1x128xf32>,
    %c12_i32 = arith.constant 12 : i32
    %43 = arith.addi %0, %c12_i32 : i32
    %cst_40 = arith.constant 0.000000e+00 : f32
    %44 = vector.broadcast %cst_40 : f32 to vector<1x128xf32>
    %c0_i32_41 = arith.constant 0 : i32
    %c2_i32_42 = arith.constant 2 : i32
    %45 = arith.addi %c0_i32_41, %c2_i32_42 : i32
    %c1_i32_43 = arith.constant 1 : i32
    %46 = scf.for %arg7 = %c0_i32_41 to %45 step %c1_i32_43 iter_args(%arg8 = %44) -> (vector<1x128xf32>)  : i32 {
      %120 = arith.addi %43, %arg7 : i32
      %121 = arith.index_cast %120 : i32 to index
      %122 = memref.load %arg1[%121] : memref<32xi32, #tpu.memory_space<smem>>
      %123 = arith.index_cast %122 : i32 to index
      %c0_119 = arith.constant 0 : index
      %c0_120 = arith.constant 0 : index
      %124 = vector.load %arg2[%123, %c0_119, %c0_120] : memref<64x1x128xf32, #tpu.memory_space<vmem>>, vector<1x1x128xf32>
      %125 = vector.shape_cast %124 : vector<1x1x128xf32> to vector<1x128xf32>
      %126 = arith.addf %arg8, %125 : vector<1x128xf32>
      scf.yield %126 : vector<1x128xf32>
    }
    %c2_i32_44 = arith.constant 2 : i32
    %cst_45 = arith.constant 5.000000e-01 : f32
    %47 = vector.broadcast %cst_45 : f32 to vector<1x128xf32>
    %48 = arith.mulf %46, %47 : vector<1x128xf32>
    %c6 = arith.constant 6 : index
    %c0_46 = arith.constant 0 : index
    %49 = vector.load %arg6[%c6, %c0_46] : memref<16x128xf32, #tpu.memory_space<vmem>>, vector<1x128xf32>
    tpu.vector_store %arg6[%c6, %c0_46], %48 {strides = array<i32>} : memref<16x128xf32, #tpu.memory_space<vmem>>, vector<1x128xf32>,
    %c14_i32 = arith.constant 14 : i32
    %50 = arith.addi %0, %c14_i32 : i32
    %cst_47 = arith.constant 0.000000e+00 : f32
    %51 = vector.broadcast %cst_47 : f32 to vector<1x128xf32>
    %c0_i32_48 = arith.constant 0 : i32
    %c2_i32_49 = arith.constant 2 : i32
    %52 = arith.addi %c0_i32_48, %c2_i32_49 : i32
    %c1_i32_50 = arith.constant 1 : i32
    %53 = scf.for %arg7 = %c0_i32_48 to %52 step %c1_i32_50 iter_args(%arg8 = %51) -> (vector<1x128xf32>)  : i32 {
      %120 = arith.addi %50, %arg7 : i32
      %121 = arith.index_cast %120 : i32 to index
      %122 = memref.load %arg1[%121] : memref<32xi32, #tpu.memory_space<smem>>
      %123 = arith.index_cast %122 : i32 to index
      %c0_119 = arith.constant 0 : index
      %c0_120 = arith.constant 0 : index
      %124 = vector.load %arg2[%123, %c0_119, %c0_120] : memref<64x1x128xf32, #tpu.memory_space<vmem>>, vector<1x1x128xf32>
      %125 = vector.shape_cast %124 : vector<1x1x128xf32> to vector<1x128xf32>
      %126 = arith.addf %arg8, %125 : vector<1x128xf32>
      scf.yield %126 : vector<1x128xf32>
    }
    %c2_i32_51 = arith.constant 2 : i32
    %cst_52 = arith.constant 5.000000e-01 : f32
    %54 = vector.broadcast %cst_52 : f32 to vector<1x128xf32>
    %55 = arith.mulf %53, %54 : vector<1x128xf32>
    %c7 = arith.constant 7 : index
    %c0_53 = arith.constant 0 : index
    %56 = vector.load %arg6[%c7, %c0_53] : memref<16x128xf32, #tpu.memory_space<vmem>>, vector<1x128xf32>
    tpu.vector_store %arg6[%c7, %c0_53], %55 {strides = array<i32>} : memref<16x128xf32, #tpu.memory_space<vmem>>, vector<1x128xf32>,
    %c16_i32 = arith.constant 16 : i32
    %57 = arith.addi %0, %c16_i32 : i32
    %cst_54 = arith.constant 0.000000e+00 : f32
    %58 = vector.broadcast %cst_54 : f32 to vector<1x128xf32>
    %c0_i32_55 = arith.constant 0 : i32
    %c2_i32_56 = arith.constant 2 : i32
    %59 = arith.addi %c0_i32_55, %c2_i32_56 : i32
    %c1_i32_57 = arith.constant 1 : i32
    %60 = scf.for %arg7 = %c0_i32_55 to %59 step %c1_i32_57 iter_args(%arg8 = %58) -> (vector<1x128xf32>)  : i32 {
      %120 = arith.addi %57, %arg7 : i32
      %121 = arith.index_cast %120 : i32 to index
      %122 = memref.load %arg1[%121] : memref<32xi32, #tpu.memory_space<smem>>
      %123 = arith.index_cast %122 : i32 to index
      %c0_119 = arith.constant 0 : index
      %c0_120 = arith.constant 0 : index
      %124 = vector.load %arg2[%123, %c0_119, %c0_120] : memref<64x1x128xf32, #tpu.memory_space<vmem>>, vector<1x1x128xf32>
      %125 = vector.shape_cast %124 : vector<1x1x128xf32> to vector<1x128xf32>
      %126 = arith.addf %arg8, %125 : vector<1x128xf32>
      scf.yield %126 : vector<1x128xf32>
    }
    %c2_i32_58 = arith.constant 2 : i32
    %cst_59 = arith.constant 5.000000e-01 : f32
    %61 = vector.broadcast %cst_59 : f32 to vector<1x128xf32>
    %62 = arith.mulf %60, %61 : vector<1x128xf32>
    %c8 = arith.constant 8 : index
    %c0_60 = arith.constant 0 : index
    %63 = vector.load %arg6[%c8, %c0_60] : memref<16x128xf32, #tpu.memory_space<vmem>>, vector<1x128xf32>
    tpu.vector_store %arg6[%c8, %c0_60], %62 {strides = array<i32>} : memref<16x128xf32, #tpu.memory_space<vmem>>, vector<1x128xf32>,
    %c18_i32 = arith.constant 18 : i32
    %64 = arith.addi %0, %c18_i32 : i32
    %cst_61 = arith.constant 0.000000e+00 : f32
    %65 = vector.broadcast %cst_61 : f32 to vector<1x128xf32>
    %c0_i32_62 = arith.constant 0 : i32
    %c2_i32_63 = arith.constant 2 : i32
    %66 = arith.addi %c0_i32_62, %c2_i32_63 : i32
    %c1_i32_64 = arith.constant 1 : i32
    %67 = scf.for %arg7 = %c0_i32_62 to %66 step %c1_i32_64 iter_args(%arg8 = %65) -> (vector<1x128xf32>)  : i32 {
      %120 = arith.addi %64, %arg7 : i32
      %121 = arith.index_cast %120 : i32 to index
      %122 = memref.load %arg1[%121] : memref<32xi32, #tpu.memory_space<smem>>
      %123 = arith.index_cast %122 : i32 to index
      %c0_119 = arith.constant 0 : index
      %c0_120 = arith.constant 0 : index
      %124 = vector.load %arg2[%123, %c0_119, %c0_120] : memref<64x1x128xf32, #tpu.memory_space<vmem>>, vector<1x1x128xf32>
      %125 = vector.shape_cast %124 : vector<1x1x128xf32> to vector<1x128xf32>
      %126 = arith.addf %arg8, %125 : vector<1x128xf32>
      scf.yield %126 : vector<1x128xf32>
    }
    %c2_i32_65 = arith.constant 2 : i32
    %cst_66 = arith.constant 5.000000e-01 : f32
    %68 = vector.broadcast %cst_66 : f32 to vector<1x128xf32>
    %69 = arith.mulf %67, %68 : vector<1x128xf32>
    %c9 = arith.constant 9 : index
    %c0_67 = arith.constant 0 : index
    %70 = vector.load %arg6[%c9, %c0_67] : memref<16x128xf32, #tpu.memory_space<vmem>>, vector<1x128xf32>
    tpu.vector_store %arg6[%c9, %c0_67], %69 {strides = array<i32>} : memref<16x128xf32, #tpu.memory_space<vmem>>, vector<1x128xf32>,
    %c20_i32 = arith.constant 20 : i32
    %71 = arith.addi %0, %c20_i32 : i32
    %cst_68 = arith.constant 0.000000e+00 : f32
    %72 = vector.broadcast %cst_68 : f32 to vector<1x128xf32>
    %c0_i32_69 = arith.constant 0 : i32
    %c2_i32_70 = arith.constant 2 : i32
    %73 = arith.addi %c0_i32_69, %c2_i32_70 : i32
    %c1_i32_71 = arith.constant 1 : i32
    %74 = scf.for %arg7 = %c0_i32_69 to %73 step %c1_i32_71 iter_args(%arg8 = %72) -> (vector<1x128xf32>)  : i32 {
      %120 = arith.addi %71, %arg7 : i32
      %121 = arith.index_cast %120 : i32 to index
      %122 = memref.load %arg1[%121] : memref<32xi32, #tpu.memory_space<smem>>
      %123 = arith.index_cast %122 : i32 to index
      %c0_119 = arith.constant 0 : index
      %c0_120 = arith.constant 0 : index
      %124 = vector.load %arg2[%123, %c0_119, %c0_120] : memref<64x1x128xf32, #tpu.memory_space<vmem>>, vector<1x1x128xf32>
      %125 = vector.shape_cast %124 : vector<1x1x128xf32> to vector<1x128xf32>
      %126 = arith.addf %arg8, %125 : vector<1x128xf32>
      scf.yield %126 : vector<1x128xf32>
    }
    %c2_i32_72 = arith.constant 2 : i32
    %cst_73 = arith.constant 5.000000e-01 : f32
    %75 = vector.broadcast %cst_73 : f32 to vector<1x128xf32>
    %76 = arith.mulf %74, %75 : vector<1x128xf32>
    %c10 = arith.constant 10 : index
    %c0_74 = arith.constant 0 : index
    %77 = vector.load %arg6[%c10, %c0_74] : memref<16x128xf32, #tpu.memory_space<vmem>>, vector<1x128xf32>
    tpu.vector_store %arg6[%c10, %c0_74], %76 {strides = array<i32>} : memref<16x128xf32, #tpu.memory_space<vmem>>, vector<1x128xf32>,
    %c22_i32 = arith.constant 22 : i32
    %78 = arith.addi %0, %c22_i32 : i32
    %cst_75 = arith.constant 0.000000e+00 : f32
    %79 = vector.broadcast %cst_75 : f32 to vector<1x128xf32>
    %c0_i32_76 = arith.constant 0 : i32
    %c2_i32_77 = arith.constant 2 : i32
    %80 = arith.addi %c0_i32_76, %c2_i32_77 : i32
    %c1_i32_78 = arith.constant 1 : i32
    %81 = scf.for %arg7 = %c0_i32_76 to %80 step %c1_i32_78 iter_args(%arg8 = %79) -> (vector<1x128xf32>)  : i32 {
      %120 = arith.addi %78, %arg7 : i32
      %121 = arith.index_cast %120 : i32 to index
      %122 = memref.load %arg1[%121] : memref<32xi32, #tpu.memory_space<smem>>
      %123 = arith.index_cast %122 : i32 to index
      %c0_119 = arith.constant 0 : index
      %c0_120 = arith.constant 0 : index
      %124 = vector.load %arg2[%123, %c0_119, %c0_120] : memref<64x1x128xf32, #tpu.memory_space<vmem>>, vector<1x1x128xf32>
      %125 = vector.shape_cast %124 : vector<1x1x128xf32> to vector<1x128xf32>
      %126 = arith.addf %arg8, %125 : vector<1x128xf32>
      scf.yield %126 : vector<1x128xf32>
    }
    %c2_i32_79 = arith.constant 2 : i32
    %cst_80 = arith.constant 5.000000e-01 : f32
    %82 = vector.broadcast %cst_80 : f32 to vector<1x128xf32>
    %83 = arith.mulf %81, %82 : vector<1x128xf32>
    %c11 = arith.constant 11 : index
    %c0_81 = arith.constant 0 : index
    %84 = vector.load %arg6[%c11, %c0_81] : memref<16x128xf32, #tpu.memory_space<vmem>>, vector<1x128xf32>
    tpu.vector_store %arg6[%c11, %c0_81], %83 {strides = array<i32>} : memref<16x128xf32, #tpu.memory_space<vmem>>, vector<1x128xf32>,
    %c24_i32 = arith.constant 24 : i32
    %85 = arith.addi %0, %c24_i32 : i32
    %cst_82 = arith.constant 0.000000e+00 : f32
    %86 = vector.broadcast %cst_82 : f32 to vector<1x128xf32>
    %c0_i32_83 = arith.constant 0 : i32
    %c2_i32_84 = arith.constant 2 : i32
    %87 = arith.addi %c0_i32_83, %c2_i32_84 : i32
    %c1_i32_85 = arith.constant 1 : i32
    %88 = scf.for %arg7 = %c0_i32_83 to %87 step %c1_i32_85 iter_args(%arg8 = %86) -> (vector<1x128xf32>)  : i32 {
      %120 = arith.addi %85, %arg7 : i32
      %121 = arith.index_cast %120 : i32 to index
      %122 = memref.load %arg1[%121] : memref<32xi32, #tpu.memory_space<smem>>
      %123 = arith.index_cast %122 : i32 to index
      %c0_119 = arith.constant 0 : index
      %c0_120 = arith.constant 0 : index
      %124 = vector.load %arg2[%123, %c0_119, %c0_120] : memref<64x1x128xf32, #tpu.memory_space<vmem>>, vector<1x1x128xf32>
      %125 = vector.shape_cast %124 : vector<1x1x128xf32> to vector<1x128xf32>
      %126 = arith.addf %arg8, %125 : vector<1x128xf32>
      scf.yield %126 : vector<1x128xf32>
    }
    %c2_i32_86 = arith.constant 2 : i32
    %cst_87 = arith.constant 5.000000e-01 : f32
    %89 = vector.broadcast %cst_87 : f32 to vector<1x128xf32>
    %90 = arith.mulf %88, %89 : vector<1x128xf32>
    %c12 = arith.constant 12 : index
    %c0_88 = arith.constant 0 : index
    %91 = vector.load %arg6[%c12, %c0_88] : memref<16x128xf32, #tpu.memory_space<vmem>>, vector<1x128xf32>
    tpu.vector_store %arg6[%c12, %c0_88], %90 {strides = array<i32>} : memref<16x128xf32, #tpu.memory_space<vmem>>, vector<1x128xf32>,
    %c26_i32 = arith.constant 26 : i32
    %92 = arith.addi %0, %c26_i32 : i32
    %cst_89 = arith.constant 0.000000e+00 : f32
    %93 = vector.broadcast %cst_89 : f32 to vector<1x128xf32>
    %c0_i32_90 = arith.constant 0 : i32
    %c2_i32_91 = arith.constant 2 : i32
    %94 = arith.addi %c0_i32_90, %c2_i32_91 : i32
    %c1_i32_92 = arith.constant 1 : i32
    %95 = scf.for %arg7 = %c0_i32_90 to %94 step %c1_i32_92 iter_args(%arg8 = %93) -> (vector<1x128xf32>)  : i32 {
      %120 = arith.addi %92, %arg7 : i32
      %121 = arith.index_cast %120 : i32 to index
      %122 = memref.load %arg1[%121] : memref<32xi32, #tpu.memory_space<smem>>
      %123 = arith.index_cast %122 : i32 to index
      %c0_119 = arith.constant 0 : index
      %c0_120 = arith.constant 0 : index
      %124 = vector.load %arg2[%123, %c0_119, %c0_120] : memref<64x1x128xf32, #tpu.memory_space<vmem>>, vector<1x1x128xf32>
      %125 = vector.shape_cast %124 : vector<1x1x128xf32> to vector<1x128xf32>
      %126 = arith.addf %arg8, %125 : vector<1x128xf32>
      scf.yield %126 : vector<1x128xf32>
    }
    %c2_i32_93 = arith.constant 2 : i32
    %cst_94 = arith.constant 5.000000e-01 : f32
    %96 = vector.broadcast %cst_94 : f32 to vector<1x128xf32>
    %97 = arith.mulf %95, %96 : vector<1x128xf32>
    %c13 = arith.constant 13 : index
    %c0_95 = arith.constant 0 : index
    %98 = vector.load %arg6[%c13, %c0_95] : memref<16x128xf32, #tpu.memory_space<vmem>>, vector<1x128xf32>
    tpu.vector_store %arg6[%c13, %c0_95], %97 {strides = array<i32>} : memref<16x128xf32, #tpu.memory_space<vmem>>, vector<1x128xf32>,
    %c28_i32 = arith.constant 28 : i32
    %99 = arith.addi %0, %c28_i32 : i32
    %cst_96 = arith.constant 0.000000e+00 : f32
    %100 = vector.broadcast %cst_96 : f32 to vector<1x128xf32>
    %c0_i32_97 = arith.constant 0 : i32
    %c2_i32_98 = arith.constant 2 : i32
    %101 = arith.addi %c0_i32_97, %c2_i32_98 : i32
    %c1_i32_99 = arith.constant 1 : i32
    %102 = scf.for %arg7 = %c0_i32_97 to %101 step %c1_i32_99 iter_args(%arg8 = %100) -> (vector<1x128xf32>)  : i32 {
      %120 = arith.addi %99, %arg7 : i32
      %121 = arith.index_cast %120 : i32 to index
      %122 = memref.load %arg1[%121] : memref<32xi32, #tpu.memory_space<smem>>
      %123 = arith.index_cast %122 : i32 to index
      %c0_119 = arith.constant 0 : index
      %c0_120 = arith.constant 0 : index
      %124 = vector.load %arg2[%123, %c0_119, %c0_120] : memref<64x1x128xf32, #tpu.memory_space<vmem>>, vector<1x1x128xf32>
      %125 = vector.shape_cast %124 : vector<1x1x128xf32> to vector<1x128xf32>
      %126 = arith.addf %arg8, %125 : vector<1x128xf32>
      scf.yield %126 : vector<1x128xf32>
    }
    %c2_i32_100 = arith.constant 2 : i32
    %cst_101 = arith.constant 5.000000e-01 : f32
    %103 = vector.broadcast %cst_101 : f32 to vector<1x128xf32>
    %104 = arith.mulf %102, %103 : vector<1x128xf32>
    %c14 = arith.constant 14 : index
    %c0_102 = arith.constant 0 : index
    %105 = vector.load %arg6[%c14, %c0_102] : memref<16x128xf32, #tpu.memory_space<vmem>>, vector<1x128xf32>
    tpu.vector_store %arg6[%c14, %c0_102], %104 {strides = array<i32>} : memref<16x128xf32, #tpu.memory_space<vmem>>, vector<1x128xf32>,
    %c30_i32 = arith.constant 30 : i32
    %106 = arith.addi %0, %c30_i32 : i32
    %cst_103 = arith.constant 0.000000e+00 : f32
    %107 = vector.broadcast %cst_103 : f32 to vector<1x128xf32>
    %c0_i32_104 = arith.constant 0 : i32
    %c2_i32_105 = arith.constant 2 : i32
    %108 = arith.addi %c0_i32_104, %c2_i32_105 : i32
    %c1_i32_106 = arith.constant 1 : i32
    %109 = scf.for %arg7 = %c0_i32_104 to %108 step %c1_i32_106 iter_args(%arg8 = %107) -> (vector<1x128xf32>)  : i32 {
      %120 = arith.addi %106, %arg7 : i32
      %121 = arith.index_cast %120 : i32 to index
      %122 = memref.load %arg1[%121] : memref<32xi32, #tpu.memory_space<smem>>
      %123 = arith.index_cast %122 : i32 to index
      %c0_119 = arith.constant 0 : index
      %c0_120 = arith.constant 0 : index
      %124 = vector.load %arg2[%123, %c0_119, %c0_120] : memref<64x1x128xf32, #tpu.memory_space<vmem>>, vector<1x1x128xf32>
      %125 = vector.shape_cast %124 : vector<1x1x128xf32> to vector<1x128xf32>
      %126 = arith.addf %arg8, %125 : vector<1x128xf32>
      scf.yield %126 : vector<1x128xf32>
    }
    %c2_i32_107 = arith.constant 2 : i32
    %cst_108 = arith.constant 5.000000e-01 : f32
    %110 = vector.broadcast %cst_108 : f32 to vector<1x128xf32>
    %111 = arith.mulf %109, %110 : vector<1x128xf32>
    %c15 = arith.constant 15 : index
    %c0_109 = arith.constant 0 : index
    %112 = vector.load %arg6[%c15, %c0_109] : memref<16x128xf32, #tpu.memory_space<vmem>>, vector<1x128xf32>
    tpu.vector_store %arg6[%c15, %c0_109], %111 {strides = array<i32>} : memref<16x128xf32, #tpu.memory_space<vmem>>, vector<1x128xf32>,
    %c0_110 = arith.constant 0 : index
    %c0_111 = arith.constant 0 : index
    %113 = vector.load %arg6[%c0_110, %c0_111] : memref<16x128xf32, #tpu.memory_space<vmem>>, vector<16x128xf32>
    %c0_112 = arith.constant 0 : index
    %c0_113 = arith.constant 0 : index
    %114 = vector.load %arg3[%c0_112, %c0_113] : memref<128x128xf32, #tpu.memory_space<vmem>>, vector<128x128xf32>
    %cst_114 = arith.constant dense<0.000000e+00> : vector<16x128xf32>
    %115 = tpu.matmul %113, %114, %cst_114 {dimension_numbers = #tpu.dot_dimension_numbers<[1], [0], [0], [1], [0, 0, 1, 1], [], []>} : vector<16x128xf32>, vector<128x128xf32>, vector<16x128xf32> -> vector<16x128xf32>
    %c0_115 = arith.constant 0 : index
    %c0_116 = arith.constant 0 : index
    %116 = vector.load %arg4[%c0_115, %c0_116] : memref<1x128xf32, #tpu.memory_space<vmem>>, vector<1x128xf32>
    %117 = vector.broadcast %116 : vector<1x128xf32> to vector<16x128xf32>
    %118 = arith.addf %115, %117 : vector<16x128xf32>
    %c0_117 = arith.constant 0 : index
    %c0_118 = arith.constant 0 : index
    %119 = vector.load %arg5[%c0_117, %c0_118] : memref<16x128xf32, #tpu.memory_space<vmem>>, vector<16x128xf32>
    tpu.vector_store %arg5[%c0_117, %c0_118], %118 {strides = array<i32>} : memref<16x128xf32, #tpu.memory_space<vmem>>, vector<16x128xf32>,
    return
  }
  func.func @transform_0(%arg0: i32, %arg1: memref<32xi32, #tpu.memory_space<smem>>) -> (i32, i32, i32) {
    %c0_i32 = arith.constant 0 : i32
    %c0_i32_0 = arith.constant 0 : i32
    %c0_i32_1 = arith.constant 0 : i32
    %c0_i32_2 = arith.constant 0 : i32
    return %c0_i32, %c0_i32_0, %c0_i32_1 : i32, i32, i32
  }
  func.func @transform_1(%arg0: i32, %arg1: memref<32xi32, #tpu.memory_space<smem>>) -> (i32, i32) {
    %c0_i32 = arith.constant 0 : i32
    %c0_i32_0 = arith.constant 0 : i32
    %c0_i32_1 = arith.constant 0 : i32
    return %c0_i32, %c0_i32_0 : i32, i32
  }
  func.func @transform_2(%arg0: i32, %arg1: memref<32xi32, #tpu.memory_space<smem>>) -> (i32, i32) {
    %c0_i32 = arith.constant 0 : i32
    %c0_i32_0 = arith.constant 0 : i32
    %c0_i32_1 = arith.constant 0 : i32
    return %c0_i32, %c0_i32_0 : i32, i32
  }
  func.func @transform_3(%arg0: i32, %arg1: memref<32xi32, #tpu.memory_space<smem>>) -> (i32, i32) {
    %c0_i32 = arith.constant 0 : i32
    %c0_i32_0 = arith.constant 0 : i32
    return %arg0, %c0_i32 : i32, i32
  }
}

</mosaic_0001>

<bundles_post_ra>
// kernel: tpu_custom_call.1
= control target key start
LH: loop header
LB: loop body
LE: loop exit
PB: predicated region body
PF: predicated region fallthrough
CT: control target
= control target key end

     0   :  { %s1136_s18 = smov [#allocation4]   ;;  %s1190_s0 = inlined_call_operand.hbm [shape: s32[32], index: 0, kind: input, shape index: {}]   ;;  %s1191_s1 = inlined_call_operand.hbm [shape: f32[64,1,128], index: 1, kind: input, shape index: {}]   ;;  %s1192_s2 = inlined_call_operand.hbm [shape: f32[128,128], index: 2, kind: input, shape index: {}]   ;;  %s1193_s3 = inlined_call_operand.vmem [shape: f32[1,128], index: 3, kind: input, shape index: {}]   ;;  %s1194_s4 = inlined_call_operand.hbm [shape: f32[16,128], index: 4, kind: output, shape index: {}]  }
   0x1   :  { %s10_s17 = sshll.u32 %s1190_s0, 4  ;;  %s11_s17 = int_to_ptr.hbm [resolvable:$true] %s10_s17 }
   0x2   :  { %13 = dma.hbm_to_smem %s11_s17, 16, %s1136_s18, [#allocation3] }
   0x3   :  { %1000 = dma.done.wait [#allocation3], 16 }
   0x4   :  { %1001 = vsyncadd [#allocation3], 4294967280 }
   0x5   :  { %16 = sfence }
   0x6   :  { %17 = vsyncpa [#allocation6], 0 }
   0x7   :  { %18 = vsyncpa [#allocation9], 0 }
   0x8   :  { %19 = vsyncpa [#allocation7], 0  ;;  %s24_s21 = sshll.u32 %s1191_s1, 4  ;;  %s1137_s22 = smov [#allocation5]   ;;  %s25_s21 = int_to_ptr.hbm [resolvable:$true] %s24_s21 }
   0x9   :  { %s26_s23 = sshll.u32 %s1137_s22, 4  ;;  %s37_s0 = sshll.u32 %s1192_s2, 4  ;;  %s27_s23 = int_to_ptr.vmem [resolvable:$true] %s26_s23  ;;  %s38_s0 = int_to_ptr.hbm [resolvable:$true] %s37_s0 }
   0xa   :  { %s1138_s26 = smov 16   ;;  %s1139_s27 = smov 1  }
   0xb   :  { %32 = dma.hbm_to_vmem [thread:$0]  %s25_s21, 1024, %s27_s23, [#allocation6], %s1138_s26, %s1138_s26, %s1139_s27  }
   0xc   :  { %s1140_s28 = smov [#allocation8]   ;;  %s1141_s30 = smov 128  }
   0xd   :  { %s39_s29 = sshll.u32 %s1140_s28, 4  ;;  %s1142_s5 = smov 8   ;;  %s40_s29 = int_to_ptr.vmem [resolvable:$true] %s39_s29 }
   0xe   :  { %45 = dma.hbm_to_vmem [thread:$0]  %s38_s0, 2048, %s40_s29, [#allocation9], %s1141_s30, %s1141_s30, %s1142_s5  }
   0xf   :  { %1002 = dma.done.wait [#allocation6], 1024  }
  0x10   :  { %1003 = vsyncadd [#allocation6], 4294966272 }
  0x11   :  { %1004 = dma.done.wait [#allocation9], 2048  }
  0x12   :  { %1005 = vsyncadd [#allocation9], 4294965248  ;;  %v1008_v0 = vmov 0.0   ;;  %s1012_s1 = smov 0  }
  0x13 LB: > { %s65_s2 = sld [smem:[#allocation4 + %s1014_s1]]  ;;  %s62_s1 = sadd.s32 1, %s1014_s1   ;;  %s1014_s1 = sphi %s1012_s1, %s62_s1   ;;  %v1010_v0 = vphi %v1008_v0, %v1009_v0  }
  0x14   : > { %p59_p0 = scmp.ge.s32.totalorder %s62_s1, 2  }
  0x15   :  { %v1016_v4 = vmov (%p59_p0), 0.0   ;;  %s1020_s7 = smov (%p59_p0), 0  }
  0x19   : > { %s66_s6 = scalar_lea.vmem [#allocation5], %s65_s2  ;;  %61 = sbr.rel (!%p59_p0) target bundleno = 19 (0x13), region = 168 }
  0x1a   : > { %v67_v1 = vld [vmem:[%s66_s6] sm:$0x1] }
  0x1b   : > { %v68_v2 = vadd.f32 %v1010_v0, %v67_v1  }
  0x1d   : > { %v1009_v0 = vmov %v68_v2   ;;  %v69_v3 = vmul.f32 (%p59_p0), 0.5, %v68_v2 }
  0x1f   :  { %70 = vst [vmem:[#allocation2] sm:$0x1] %v69_v3 }
  0x20 LB: > { %s79_s8 = sadd.s32 2, %s1022_s7  ;;  %s77_s7 = sadd.s32 1, %s1022_s7   ;;  %s1022_s7 = sphi %s1020_s7, %s77_s7   ;;  %v1018_v4 = vphi %v1016_v4, %v1017_v4  }
  0x21   : > { %s80_s9 = sld [smem:[#allocation4 + %s79_s8]]  ;;  %p74_p1 = scmp.ge.s32.totalorder %s77_s7, 2  }
  0x22   :  { %v1024_v8 = vmov (%p74_p1), 0.0   ;;  %s1028_s11 = smov (%p74_p1), 0  }
  0x27   : > { %s81_s10 = scalar_lea.vmem [#allocation5], %s80_s9  ;;  %76 = sbr.rel (!%p74_p1) target bundleno = 32 (0x20), region = 179 }
  0x28   : > { %v82_v5 = vld [vmem:[%s81_s10] sm:$0x1] }
  0x29   : > { %v83_v6 = vadd.f32 %v1018_v4, %v82_v5  }
  0x2b   : > { %v1017_v4 = vmov %v83_v6   ;;  %v84_v7 = vmul.f32 (%p74_p1), 0.5, %v83_v6 }
  0x2d   :  { %85 = vst [vmem:[#allocation2 + $0x1] sm:$0x1] %v84_v7 }
  0x2e LB: > { %s94_s12 = sadd.s32 4, %s1030_s11  ;;  %s92_s11 = sadd.s32 1, %s1030_s11   ;;  %s1030_s11 = sphi %s1028_s11, %s92_s11   ;;  %v1026_v8 = vphi %v1024_v8, %v1025_v8  }
  0x2f   : > { %s95_s13 = sld [smem:[#allocation4 + %s94_s12]]  ;;  %p89_p2 = scmp.ge.s32.totalorder %s92_s11, 2  }
  0x30   :  { %v1032_v12 = vmov (%p89_p2), 0.0   ;;  %s1036_s15 = smov (%p89_p2), 0  }
  0x35   : > { %s96_s14 = scalar_lea.vmem [#allocation5], %s95_s13  ;;  %91 = sbr.rel (!%p89_p2) target bundleno = 46 (0x2e), region = 190 }
  0x36   : > { %v97_v9 = vld [vmem:[%s96_s14] sm:$0x1] }
  0x37   : > { %v98_v10 = vadd.f32 %v1026_v8, %v97_v9  }
  0x39   : > { %v1025_v8 = vmov %v98_v10   ;;  %v99_v11 = vmul.f32 (%p89_p2), 0.5, %v98_v10 }
  0x3b   :  { %100 = vst [vmem:[#allocation2 + $0x2] sm:$0x1] %v99_v11 }
  0x3c LB: > { %s109_s16 = sadd.s32 6, %s1038_s15  ;;  %s107_s15 = sadd.s32 1, %s1038_s15   ;;  %s1038_s15 = sphi %s1036_s15, %s107_s15   ;;  %v1034_v12 = vphi %v1032_v12, %v1033_v12  }
  0x3d   : > { %s110_s17 = sld [smem:[#allocation4 + %s109_s16]]  ;;  %p104_p3 = scmp.ge.s32.totalorder %s107_s15, 2  }
  0x3e   :  { %v1040_v16 = vmov (%p104_p3), 0.0   ;;  %s1044_s19 = smov (%p104_p3), 0  }
  0x43   : > { %s111_s18 = scalar_lea.vmem [#allocation5], %s110_s17  ;;  %106 = sbr.rel (!%p104_p3) target bundleno = 60 (0x3c), region = 201 }
  0x44   : > { %v112_v13 = vld [vmem:[%s111_s18] sm:$0x1] }
  0x45   : > { %v113_v14 = vadd.f32 %v1034_v12, %v112_v13  }
  0x47   : > { %v1033_v12 = vmov %v113_v14   ;;  %v114_v15 = vmul.f32 (%p104_p3), 0.5, %v113_v14 }
  0x49   :  { %115 = vst [vmem:[#allocation2 + $0x3] sm:$0x1] %v114_v15 }
  0x4a LB: > { %s124_s20 = sadd.s32 8, %s1046_s19  ;;  %s122_s19 = sadd.s32 1, %s1046_s19   ;;  %s1046_s19 = sphi %s1044_s19, %s122_s19   ;;  %v1042_v16 = vphi %v1040_v16, %v1041_v16  }
  0x4b   : > { %s125_s21 = sld [smem:[#allocation4 + %s124_s20]]  ;;  %p119_p4 = scmp.ge.s32.totalorder %s122_s19, 2  }
  0x4c   :  { %v1048_v20 = vmov (%p119_p4), 0.0   ;;  %s1052_s23 = smov (%p119_p4), 0  }
  0x51   : > { %s126_s22 = scalar_lea.vmem [#allocation5], %s125_s21  ;;  %121 = sbr.rel (!%p119_p4) target bundleno = 74 (0x4a), region = 212 }
  0x52   : > { %v127_v17 = vld [vmem:[%s126_s22] sm:$0x1] }
  0x53   : > { %v128_v18 = vadd.f32 %v1042_v16, %v127_v17  }
  0x55   : > { %v1041_v16 = vmov %v128_v18   ;;  %v129_v19 = vmul.f32 (%p119_p4), 0.5, %v128_v18 }
  0x57   :  { %130 = vst [vmem:[#allocation2 + $0x4] sm:$0x1] %v129_v19 }
  0x58 LB: > { %s139_s24 = sadd.s32 10, %s1054_s23  ;;  %s137_s23 = sadd.s32 1, %s1054_s23   ;;  %s1054_s23 = sphi %s1052_s23, %s137_s23   ;;  %v1050_v20 = vphi %v1048_v20, %v1049_v20  }
  0x59   : > { %s140_s25 = sld [smem:[#allocation4 + %s139_s24]]  ;;  %p134_p5 = scmp.ge.s32.totalorder %s137_s23, 2  }
  0x5a   :  { %v1056_v24 = vmov (%p134_p5), 0.0   ;;  %s1060_s26 = smov (%p134_p5), 0  }
  0x5f   : > { %s141_s0 = scalar_lea.vmem [#allocation5], %s140_s25  ;;  %136 = sbr.rel (!%p134_p5) target bundleno = 88 (0x58), region = 223 }
  0x60   : > { %v142_v21 = vld [vmem:[%s141_s0] sm:$0x1] }
  0x61   : > { %v143_v22 = vadd.f32 %v1050_v20, %v142_v21  }
  0x63   : > { %v1049_v20 = vmov %v143_v22   ;;  %v144_v23 = vmul.f32 (%p134_p5), 0.5, %v143_v22 }
  0x65   :  { %145 = vst [vmem:[#allocation2 + $0x5] sm:$0x1] %v144_v23 }
  0x66 LB: > { %s154_s27 = sadd.s32 12, %s1062_s26  ;;  %s152_s26 = sadd.s32 1, %s1062_s26   ;;  %s1062_s26 = sphi %s1060_s26, %s152_s26   ;;  %v1058_v24 = vphi %v1056_v24, %v1057_v24  }
  0x67   : > { %s155_s28 = sld [smem:[#allocation4 + %s154_s27]]  ;;  %p149_p6 = scmp.ge.s32.totalorder %s152_s26, 2  }
  0x68   :  { %v1064_v28 = vmov (%p149_p6), 0.0   ;;  %s1068_s1 = smov (%p149_p6), 0  }
  0x6d   : > { %s156_s29 = scalar_lea.vmem [#allocation5], %s155_s28  ;;  %151 = sbr.rel (!%p149_p6) target bundleno = 102 (0x66), region = 234 }
  0x6e   : > { %v157_v25 = vld [vmem:[%s156_s29] sm:$0x1] }
  0x6f   : > { %v158_v26 = vadd.f32 %v1058_v24, %v157_v25  }
  0x71   : > { %v1057_v24 = vmov %v158_v26   ;;  %v159_v27 = vmul.f32 (%p149_p6), 0.5, %v158_v26 }
  0x73   :  { %160 = vst [vmem:[#allocation2 + $0x6] sm:$0x1] %v159_v27 }
  0x74 LB: > { %s169_s2 = sadd.s32 14, %s1070_s1  ;;  %s167_s1 = sadd.s32 1, %s1070_s1   ;;  %s1070_s1 = sphi %s1068_s1, %s167_s1   ;;  %v1066_v28 = vphi %v1064_v28, %v1065_v28  }
  0x75   : > { %s170_s6 = sld [smem:[#allocation4 + %s169_s2]]  ;;  %p164_p7 = scmp.ge.s32.totalorder %s167_s1, 2  }
  0x76   :  { %v1072_v32 = vmov (%p164_p7), 0.0   ;;  %s1076_s8 = smov (%p164_p7), 0  }
  0x7b   : > { %s171_s7 = scalar_lea.vmem [#allocation5], %s170_s6  ;;  %166 = sbr.rel (!%p164_p7) target bundleno = 116 (0x74), region = 245 }
  0x7c   : > { %v172_v29 = vld [vmem:[%s171_s7] sm:$0x1] }
  0x7d   : > { %v173_v30 = vadd.f32 %v1066_v28, %v172_v29  }
  0x7f   : > { %v1065_v28 = vmov %v173_v30   ;;  %v174_v31 = vmul.f32 (%p164_p7), 0.5, %v173_v30 }
  0x81   :  { %175 = vst [vmem:[#allocation2 + $0x7] sm:$0x1] %v174_v31 }
  0x82 LB: > { %s184_s9 = sadd.s32 16, %s1078_s8  ;;  %s182_s8 = sadd.s32 1, %s1078_s8   ;;  %s1078_s8 = sphi %s1076_s8, %s182_s8   ;;  %v1074_v32 = vphi %v1072_v32, %v1073_v32  }
  0x83   : > { %s185_s10 = sld [smem:[#allocation4 + %s184_s9]]  ;;  %p179_p8 = scmp.ge.s32.totalorder %s182_s8, 2  }
  0x84   :  { %v1080_v36 = vmov (%p179_p8), 0.0   ;;  %s1084_s12 = smov (%p179_p8), 0  }
  0x89   : > { %s186_s11 = scalar_lea.vmem [#allocation5], %s185_s10  ;;  %181 = sbr.rel (!%p179_p8) target bundleno = 130 (0x82), region = 256 }
  0x8a   : > { %v187_v33 = vld [vmem:[%s186_s11] sm:$0x1] }
  0x8b   : > { %v188_v34 = vadd.f32 %v1074_v32, %v187_v33  }
  0x8d   : > { %v1073_v32 = vmov %v188_v34   ;;  %v189_v35 = vmul.f32 (%p179_p8), 0.5, %v188_v34 }
  0x8f   :  { %190 = vst [vmem:[#allocation2 + $0x8] sm:$0x1] %v189_v35 }
  0x90 LB: > { %s199_s13 = sadd.s32 18, %s1086_s12  ;;  %s197_s12 = sadd.s32 1, %s1086_s12   ;;  %s1086_s12 = sphi %s1084_s12, %s197_s12   ;;  %v1082_v36 = vphi %v1080_v36, %v1081_v36  }
  0x91   : > { %s200_s14 = sld [smem:[#allocation4 + %s199_s13]]  ;;  %p194_p9 = scmp.ge.s32.totalorder %s197_s12, 2  }
  0x92   :  { %v1088_v40 = vmov (%p194_p9), 0.0   ;;  %s1092_s16 = smov (%p194_p9), 0  }
  0x97   : > { %s201_s15 = scalar_lea.vmem [#allocation5], %s200_s14  ;;  %196 = sbr.rel (!%p194_p9) target bundleno = 144 (0x90), region = 267 }
  0x98   : > { %v202_v37 = vld [vmem:[%s201_s15] sm:$0x1] }
  0x99   : > { %v203_v38 = vadd.f32 %v1082_v36, %v202_v37  }
  0x9b   : > { %v1081_v36 = vmov %v203_v38   ;;  %v204_v39 = vmul.f32 (%p194_p9), 0.5, %v203_v38 }
  0x9d   :  { %205 = vst [vmem:[#allocation2 + $0x9] sm:$0x1] %v204_v39 }
  0x9e LB: > { %s214_s17 = sadd.s32 20, %s1094_s16  ;;  %s212_s16 = sadd.s32 1, %s1094_s16   ;;  %s1094_s16 = sphi %s1092_s16, %s212_s16   ;;  %v1090_v40 = vphi %v1088_v40, %v1089_v40  }
  0x9f   : > { %s215_s18 = sld [smem:[#allocation4 + %s214_s17]]  ;;  %p209_p10 = scmp.ge.s32.totalorder %s212_s16, 2  }
  0xa0   :  { %v1096_v44 = vmov (%p209_p10), 0.0   ;;  %s1100_s20 = smov (%p209_p10), 0  }
  0xa5   : > { %s216_s19 = scalar_lea.vmem [#allocation5], %s215_s18  ;;  %211 = sbr.rel (!%p209_p10) target bundleno = 158 (0x9e), region = 278 }
  0xa6   : > { %v217_v41 = vld [vmem:[%s216_s19] sm:$0x1] }
  0xa7   : > { %v218_v42 = vadd.f32 %v1090_v40, %v217_v41  }
  0xa9   : > { %v1089_v40 = vmov %v218_v42   ;;  %v219_v43 = vmul.f32 (%p209_p10), 0.5, %v218_v42 }
  0xab   :  { %220 = vst [vmem:[#allocation2 + $0xa] sm:$0x1] %v219_v43 }
  0xac LB: > { %s229_s21 = sadd.s32 22, %s1102_s20  ;;  %s227_s20 = sadd.s32 1, %s1102_s20   ;;  %s1102_s20 = sphi %s1100_s20, %s227_s20   ;;  %v1098_v44 = vphi %v1096_v44, %v1097_v44  }
  0xad   : > { %s230_s22 = sld [smem:[#allocation4 + %s229_s21]]  ;;  %p224_p11 = scmp.ge.s32.totalorder %s227_s20, 2  }
  0xae   :  { %v1104_v48 = vmov (%p224_p11), 0.0   ;;  %s1108_s24 = smov (%p224_p11), 0  }
  0xb3   : > { %s231_s23 = scalar_lea.vmem [#allocation5], %s230_s22  ;;  %226 = sbr.rel (!%p224_p11) target bundleno = 172 (0xac), region = 289 }
  0xb4   : > { %v232_v45 = vld [vmem:[%s231_s23] sm:$0x1] }
  0xb5   : > { %v233_v46 = vadd.f32 %v1098_v44, %v232_v45  }
  0xb7   : > { %v1097_v44 = vmov %v233_v46   ;;  %v234_v47 = vmul.f32 (%p224_p11), 0.5, %v233_v46 }
  0xb9   :  { %235 = vst [vmem:[#allocation2 + $0xb] sm:$0x1] %v234_v47 }
  0xba LB: > { %s244_s25 = sadd.s32 24, %s1110_s24  ;;  %s242_s24 = sadd.s32 1, %s1110_s24   ;;  %s1110_s24 = sphi %s1108_s24, %s242_s24   ;;  %v1106_v48 = vphi %v1104_v48, %v1105_v48  }
  0xbb   : > { %s245_s0 = sld [smem:[#allocation4 + %s244_s25]]  ;;  %p239_p12 = scmp.ge.s32.totalorder %s242_s24, 2  }
  0xbc   :  { %v1112_v52 = vmov (%p239_p12), 0.0   ;;  %s1116_s27 = smov (%p239_p12), 0  }
  0xc1   : > { %s246_s26 = scalar_lea.vmem [#allocation5], %s245_s0  ;;  %241 = sbr.rel (!%p239_p12) target bundleno = 186 (0xba), region = 300 }
  0xc2   : > { %v247_v49 = vld [vmem:[%s246_s26] sm:$0x1] }
  0xc3   : > { %v248_v50 = vadd.f32 %v1106_v48, %v247_v49  }
  0xc5   : > { %v1105_v48 = vmov %v248_v50   ;;  %v249_v51 = vmul.f32 (%p239_p12), 0.5, %v248_v50 }
  0xc7   :  { %250 = vst [vmem:[#allocation2 + $0xc] sm:$0x1] %v249_v51 }
  0xc8 LB: > { %s259_s28 = sadd.s32 26, %s1118_s27  ;;  %s257_s27 = sadd.s32 1, %s1118_s27   ;;  %s1118_s27 = sphi %s1116_s27, %s257_s27   ;;  %v1114_v52 = vphi %v1112_v52, %v1113_v52  }
  0xc9   : > { %s260_s29 = sld [smem:[#allocation4 + %s259_s28]]  ;;  %p254_p13 = scmp.ge.s32.totalorder %s257_s27, 2  }
  0xca   :  { %v1120_v56 = vmov (%p254_p13), 0.0   ;;  %s1124_s2 = smov (%p254_p13), 0  }
  0xcf   : > { %s261_s1 = scalar_lea.vmem [#allocation5], %s260_s29  ;;  %256 = sbr.rel (!%p254_p13) target bundleno = 200 (0xc8), region = 311 }
  0xd0   : > { %v262_v53 = vld [vmem:[%s261_s1] sm:$0x1] }
  0xd1   : > { %v263_v54 = vadd.f32 %v1114_v52, %v262_v53  }
  0xd3   : > { %v1113_v52 = vmov %v263_v54   ;;  %v264_v55 = vmul.f32 (%p254_p13), 0.5, %v263_v54 }
  0xd5   :  { %265 = vst [vmem:[#allocation2 + $0xd] sm:$0x1] %v264_v55 }
  0xd6 LB: > { %s274_s6 = sadd.s32 28, %s1126_s2  ;;  %s272_s2 = sadd.s32 1, %s1126_s2   ;;  %s1126_s2 = sphi %s1124_s2, %s272_s2   ;;  %v1122_v56 = vphi %v1120_v56, %v1121_v56  }
  0xd7   : > { %s275_s7 = sld [smem:[#allocation4 + %s274_s6]]  ;;  %p269_p0 = scmp.ge.s32.totalorder %s272_s2, 2  }
  0xd8   :  { %v1128_v60 = vmov (%p269_p0), 0.0   ;;  %s1132_s9 = smov (%p269_p0), 0  }
  0xdd   : > { %s276_s8 = scalar_lea.vmem [#allocation5], %s275_s7  ;;  %271 = sbr.rel (!%p269_p0) target bundleno = 214 (0xd6), region = 322 }
  0xde   : > { %v277_v57 = vld [vmem:[%s276_s8] sm:$0x1] }
  0xdf   : > { %v278_v58 = vadd.f32 %v1122_v56, %v277_v57  }
  0xe1   : > { %v1121_v56 = vmov %v278_v58   ;;  %v279_v59 = vmul.f32 (%p269_p0), 0.5, %v278_v58 }
  0xe3   :  { %280 = vst [vmem:[#allocation2 + $0xe] sm:$0x1] %v279_v59 }
  0xe4 LB: > { %s289_s10 = sadd.s32 30, %s1134_s9  ;;  %s287_s9 = sadd.s32 1, %s1134_s9   ;;  %s1134_s9 = sphi %s1132_s9, %s287_s9   ;;  %v1130_v60 = vphi %v1128_v60, %v1129_v60  }
  0xe5   : > { %s290_s11 = sld [smem:[#allocation4 + %s289_s10]]  ;;  %p284_p1 = scmp.ge.s32.totalorder %s287_s9, 2  }
  0xe6   :  { %v313_v63 = vld [vmem:[#allocation8 + $0x78] sm:$0xff] (%p284_p1)  ;;  %v312_v0 = vld [vmem:[#allocation8 + $0x70] sm:$0xff] (%p284_p1)  ;;  %v311_v2 = vld [vmem:[#allocation8 + $0x68] sm:$0xff] (%p284_p1)  ;;  %s1143_s15 = smov (%p284_p1), [#allocation10]   ;;  %s349_s19 = sshll.u32 (%p284_p1), %s1194_s4, 4  ;;  %s350_s19 = int_to_ptr.hbm [resolvable:$true] %s349_s19 }
  0xe7   :  { %318 = vmatpush.msra.mxu0 (%p284_p1), %v313_v63  ;;  %507 = vmatpush.msra.mxu1 (%p284_p1), %v313_v63  ;;  %v310_v3 = vld [vmem:[#allocation8 + $0x60] sm:$0xff] (%p284_p1)  ;;  %v309_v4 = vld [vmem:[#allocation8 + $0x58] sm:$0xff] (%p284_p1)  ;;  %v308_v5 = vld [vmem:[#allocation8 + $0x50] sm:$0xff] (%p284_p1)  ;;  %s347_s16 = sshll.u32 (%p284_p1), %s1143_s15, 4  ;;  %s348_s16 = int_to_ptr.vmem [resolvable:$true] %s347_s16 }
  0xe8   :  { %v307_v6 = vld [vmem:[#allocation8 + $0x48] sm:$0xff] (%p284_p1)  ;;  %v306_v7 = vld [vmem:[#allocation8 + $0x40] sm:$0xff] (%p284_p1)  ;;  %v305_v8 = vld [vmem:[#allocation8 + $0x38] sm:$0xff] (%p284_p1) }
  0xe9   :  { %319 = vmatpush.msra.mxu0 (%p284_p1), %v312_v0  ;;  %508 = vmatpush.msra.mxu1 (%p284_p1), %v312_v0  ;;  %v304_v9 = vld [vmem:[#allocation8 + $0x30] sm:$0xff] (%p284_p1)  ;;  %v303_v10 = vld [vmem:[#allocation8 + $0x28] sm:$0xff] (%p284_p1)  ;;  %v302_v11 = vld [vmem:[#allocation8 + $0x20] sm:$0xff] (%p284_p1) }
  0xea   :  { %v301_v12 = vld [vmem:[#allocation8 + $0x18] sm:$0xff] (%p284_p1)  ;;  %v300_v13 = vld [vmem:[#allocation8 + $0x10] sm:$0xff] (%p284_p1)  ;;  %v299_v14 = vld [vmem:[#allocation8 + $0x8] sm:$0xff] (%p284_p1) }
  0xeb   : > { %s291_s12 = scalar_lea.vmem [#allocation5], %s290_s11  ;;  %286 = sbr.rel (!%p284_p1) target bundleno = 228 (0xe4), region = 333  ;;  %320 = vmatpush.msra.mxu0 (%p284_p1), %v311_v2  ;;  %509 = vmatpush.msra.mxu1 (%p284_p1), %v311_v2  ;;  %v298_v15 = vld [vmem:[#allocation8] sm:$0xff] (%p284_p1)  ;;  %v296_v16 = vld [vmem:[#allocation2] sm:$0xff] (%p284_p1) }
  0xec   : > { %v292_v61 = vld [vmem:[%s291_s12] sm:$0x1] }
  0xed   : > { %v293_v62 = vadd.f32 %v1130_v60, %v292_v61   ;;  %321 = vmatpush.msra.mxu0 (%p284_p1), %v310_v3  ;;  %510 = vmatpush.msra.mxu1 (%p284_p1), %v310_v3  ;;  %v787_v18 = vld [vmem:[%s1193_s3] ss:$0 sm:$0xff] (%p284_p1) }
  0xef   : > { %v1129_v60 = vmov %v293_v62   ;;  %v294_v1 = vmul.f32 (%p284_p1), 0.5, %v293_v62  ;;  %322 = vmatpush.msra.mxu0 (%p284_p1), %v309_v4  ;;  %511 = vmatpush.msra.mxu1 (%p284_p1), %v309_v4 }
  0xf1   :  { %295 = vst [vmem:[#allocation2 + $0xf] sm:$0x1] %v294_v1  ;;  %323 = vmatpush.msra.mxu0 %v308_v5  ;;  %512 = vmatpush.msra.mxu1 %v308_v5 }
  0xf3   :  { %324 = vmatpush.msra.mxu0 %v307_v6  ;;  %513 = vmatpush.msra.mxu1 %v307_v6 }
  0xf5   :  { %325 = vmatpush.msra.mxu0 %v306_v7  ;;  %514 = vmatpush.msra.mxu1 %v306_v7 }
  0xf7   :  { %326 = vmatpush.msra.mxu0 %v305_v8  ;;  %515 = vmatpush.msra.mxu1 %v305_v8 }
  0xf8   :  { %v297_v17 = vld [vmem:[#allocation2 + $0x8] sm:$0xff] }
  0xf9   :  { %327 = vmatpush.msra.mxu0 %v304_v9  ;;  %516 = vmatpush.msra.mxu1 %v304_v9 }
  0xfb   :  { %328 = vmatpush.msra.mxu0 %v303_v10  ;;  %517 = vmatpush.msra.mxu1 %v303_v10 }
  0xfd   :  { %329 = vmatpush.msra.mxu0 %v302_v11  ;;  %518 = vmatpush.msra.mxu1 %v302_v11 }
  0xff   :  { %330 = vmatpush.msra.mxu0 %v301_v12  ;;  %519 = vmatpush.msra.mxu1 %v301_v12 }
 0x101   :  { %331 = vmatpush.msra.mxu0 %v300_v13  ;;  %520 = vmatpush.msra.mxu1 %v300_v13 }
 0x103   :  { %332 = vmatpush.msra.mxu0 %v299_v14  ;;  %521 = vmatpush.msra.mxu1 %v299_v14 }
 0x105   :  { %333 = vmatpush.msra.mxu0 %v298_v15  ;;  %522 = vmatpush.msra.mxu1 %v298_v15 }
 0x106   :  { %334 = vmatmul.f32.vlgmr.msra.gmra.mxu0 %v296_v16  ;;  %337 = vmatmul.f32.vlgmr.msra.gmra.mxu1 %v297_v17 }
 0x183   :  { %v335_v19 = vpop.f32.mrf.mxu0  ;;  %v338_v20 = vpop.f32.mrf.mxu1 }
 0x184   :  { %v336_v21 = vadd.f32 %v787_v18, %v335_v19  ;;  %v339_v22 = vadd.f32 %v787_v18, %v338_v20 }
 0x186   :  { %341 = vst [vmem:[#allocation10] sm:$0xff] %v336_v21 }
 0x187   :  { %342 = vst [vmem:[#allocation10 + $0x8] sm:$0xff] %v339_v22 }
 0x188   :  { %355 = dma.vmem_to_hbm [thread:$0]  %s348_s16, 256, %s350_s19, [#allocation7], %s1141_s30, %s1141_s30, %s1142_s5  }
 0x189   :  { %1006 = dma.done.wait [#allocation7], 256  }
 0x18a   :  { %1007 = vsyncadd [#allocation7], 4294967040 }
 0x18b   :  { %360 = vsyncpa [#allocation6], 1 }
 0x18c   :  { %361 = vsyncpa [#allocation9], 1 }
 0x18d   :  { %362 = vsyncpa [#allocation7], 1 }

</bundles_post_ra>
